<compile_context>
chip_gen: v5e
topology: v5e:2x2
jax: 0.10.0
libtpu: 0.0.40
codegen_flags: <defaults>
</compile_context>

<pallas_src>
import jax
import jax.numpy as jnp
from jax import lax
from jax.experimental import pallas as pl
from jax.experimental.pallas import tpu as pltpu


def _round_up(n: int, m: int) -> int:
    return ((n + m - 1) // m) * m


def _make_mlp_kernel(num_hidden: int):
    """Kernel for `num_hidden` (Linear+Tanh) layers + output Linear(last, 1).

    Kernel args: (x_ref, w0T, b0, w1T, b1, ..., w_out_col, b_out, out_ref)
      x_ref     : (TB, F_in)    f32  -- natural layout, cast to bf16 in-kernel
      wT        : (F_out, F_in) bf16 -- pre-transposed hidden weights
      b         : (F_out, 1)    f32
      w_out_col : (F_last, 1)   f32  -- output Linear weight as a column
      b_out     : (1, 1)        f32
      out_ref   : (1, TB)       f32
    """

    def kernel(x_ref, *refs):
        out_ref = refs[-1]
        params = refs[:-1]

        # Layer 0: transposed matmul (contract last dims) -> (F1, TB), i.e.
        # batch-on-lanes, without any wrapper-side transpose of x.
        x_bf = x_ref[...].astype(jnp.bfloat16)                  # (TB, F_in)
        w0T = params[0][...]                                    # (F1, F_in) bf16
        b0 = params[1][...]                                     # (F1, 1)   f32
        z = lax.dot_general(
            w0T, x_bf,
            dimension_numbers=(((1,), (1,)), ((), ())),
            preferred_element_type=jnp.float32) + b0            # (F1, TB) f32
        h = jnp.tanh(z.astype(jnp.bfloat16))                    # bf16 tanh (EUP)

        for i in range(1, num_hidden):
            wT = params[2 * i][...]                             # (F_out, F_in) bf16
            b = params[2 * i + 1][...]                          # (F_out, 1)   f32
            z = jnp.dot(wT, h, preferred_element_type=jnp.float32) + b
            h = jnp.tanh(z.astype(jnp.bfloat16))

        # Output Linear(F_last, 1) on VPU + sublane reduce (skip an M=1 MXU push).
        w_col = params[-2][...]                                 # (F_last, 1) f32
        b_out = params[-1][...]                                 # (1, 1)      f32
        out_ref[...] = (
            jnp.sum(h.astype(jnp.float32) * w_col, axis=0, keepdims=True) + b_out
        )

    return kernel


def mlp_forward(x, params, *, tile_b=4096, lane_granule=128):
    """Pallas forward for Net(layers). params = [(w0,b0), ..., (w_out,b_out)].

    x: (B, layers[0]) float32. Returns (B,) float32 for B>1 and a 0-D scalar
    for B==1 (matches torch .squeeze()).
    """
    B, f_in = x.shape
    num_hidden = len(params) - 1
    assert num_hidden >= 1, "Net needs at least one hidden (Linear+Tanh) layer"
    kernel = _make_mlp_kernel(num_hidden)

    # Batch tile: big enough to amortize grid-step overhead, capped so the grid
    # has >=2 steps when B allows it (v7x has 2 TensorCores), 128-lane granule.
    B_min = _round_up(B, lane_granule)
    half = _round_up(pl.cdiv(B_min, 2), lane_granule)
    tb = max(lane_granule, min(tile_b, half))
    B_pad = _round_up(B, tb)

    x = jnp.asarray(x, jnp.float32)
    if B_pad != B:
        # Only pads when B is not tile-aligned (trivial for small B; for large
        # batches align B to the tile to keep this a no-op).
        x = jnp.pad(x, ((0, B_pad - B), (0, 0)))

    # Flatten params: hidden weights transposed to (F_out, F_in) bf16, biases
    # (F_out, 1) f32; output weight as an (F_last, 1) f32 column.
    flat = []
    for w, b in params[:-1]:
        flat.append(jnp.asarray(w).T.astype(jnp.bfloat16))
        flat.append(jnp.asarray(b).reshape(-1, 1).astype(jnp.float32))
    w_out, b_out = params[-1]
    flat.append(jnp.asarray(w_out).reshape(-1, 1).astype(jnp.float32))
    flat.append(jnp.asarray(b_out).reshape(1, 1).astype(jnp.float32))

    grid = (B_pad // tb,)

    in_specs = [pl.BlockSpec((tb, f_in), lambda i: (i, 0))]
    for p in flat:
        # Tiny weights/biases: full array, resident every grid step.
        # Default-arg `nd=p.ndim` avoids the late-binding closure bug.
        in_specs.append(pl.BlockSpec(p.shape, lambda i, nd=p.ndim: (0,) * nd))

    out_spec = pl.BlockSpec((1, tb), lambda i: (0, i))

    # Advisory cost estimate for XLA's scheduler.
    layer_dims = [(jnp.asarray(w).shape[0], jnp.asarray(w).shape[1]) for w, _ in params]
    flops = int(2 * B_pad * sum(fi * fo for fi, fo in layer_dims))
    transcendentals = int(B_pad * sum(fo for _, fo in layer_dims[:-1]))
    bytes_accessed = int(
        B_pad * f_in * 4
        + sum(int(p.size) * p.dtype.itemsize for p in flat)
        + B_pad * 4
    )

    out = pl.pallas_call(
        kernel,
        out_shape=jax.ShapeDtypeStruct((1, B_pad), jnp.float32),
        grid_spec=pltpu.PrefetchScalarGridSpec(
            num_scalar_prefetch=0,
            grid=grid,
            in_specs=in_specs,
            out_specs=out_spec,
        ),
        compiler_params=pltpu.CompilerParams(
            dimension_semantics=("parallel",),   # shards grid over v7x's 2 TCs
            vmem_limit_bytes=32 * 1024 * 1024,   # ample for tb<=16K on all gens
        ),
        cost_estimate=pl.CostEstimate(
            flops=flops,
            transcendentals=transcendentals,
            bytes_accessed=bytes_accessed,
        ),
    )(x, *flat)

    res = out[0, :B]
    # torch .squeeze(): (B,1) -> (B,) for B>1, 0-D scalar for B==1.
    return res if B > 1 else res.reshape(())


def init_params(key, layers):
    """Deterministic init matching nn.Linear's U(-1/sqrt(fan_in), 1/sqrt(fan_in))."""
    params = []
    dims = list(zip(layers[:-1], layers[1:])) + [(layers[-1], 1)]
    for fan_in, fan_out in dims:
        key, kw, kb = jax.random.split(key, 3)
        bound = 1.0 / jnp.sqrt(jnp.float32(fan_in))
        w = jax.random.uniform(kw, (fan_in, fan_out), jnp.float32, -bound, bound)
        b = jax.random.uniform(kb, (fan_out,), jnp.float32, -bound, bound)
        params.append((w, b))
    return params


def reference_forward(x, params):
    """Plain-JAX f32 reference (mirrors the PyTorch forward)."""
    h = x
    for w, b in params[:-1]:
        h = jnp.tanh(h @ w + b)
    w_out, b_out = params[-1]
    return jnp.squeeze(h @ w_out + b_out)


if __name__ == "__main__":
    layers = [16, 32, 32]   # Net(layers): Linear(16,32)+Tanh, Linear(32,32)+Tanh, Linear(32,1)

    key = jax.random.PRNGKey(0)
    params = init_params(key, layers)

    # Case 1: small batch (single grid step).
    key, kx = jax.random.split(key)
    x = jax.random.normal(kx, (8, layers[0]), jnp.float32)
    y = jax.block_until_ready(mlp_forward(x, params))
    y_ref = reference_forward(x, params)
    assert y.shape == (8,), y.shape
    # bf16 MXU operands / bf16 tanh with f32 accumulation -> relaxed tolerance.
    assert jnp.allclose(y, y_ref, atol=3e-2, rtol=3e-2), (y, y_ref)

    # Case 2: multi-step grid (exercises blocked batch tiling / parallel axis).
    key, kx2 = jax.random.split(key)
    x2 = jax.random.normal(kx2, (384, layers[0]), jnp.float32)
    y2 = jax.block_until_ready(mlp_forward(x2, params, tile_b=128))
    y2_ref = reference_forward(x2, params)
    assert y2.shape == (384,), y2.shape
    assert jnp.allclose(y2, y2_ref, atol=3e-2, rtol=3e-2), (y2, y2_ref)

    print("KERNEL_OK")
</pallas_src>

<mosaic_0001>
module attributes {stable_mosaic.version = 11 : i64} {
  func.func @kernel(%arg0: i32, %arg1: memref<128x16xf32, #tpu.memory_space<vmem>>, %arg2: memref<32x16xbf16, #tpu.memory_space<vmem>>, %arg3: memref<32x1xf32, #tpu.memory_space<vmem>>, %arg4: memref<32x32xbf16, #tpu.memory_space<vmem>>, %arg5: memref<32x1xf32, #tpu.memory_space<vmem>>, %arg6: memref<32x1xf32, #tpu.memory_space<vmem>>, %arg7: memref<1x1xf32, #tpu.memory_space<vmem>>, %arg8: memref<1x128xf32, #tpu.memory_space<vmem>>) attributes {dimension_semantics = [#tpu.dimension_semantics<parallel>], iteration_bounds = array<i64: 1>, scalar_prefetch = 0 : i64, scratch_operands = 0 : i64, tpu.core_type = #tpu.core_type<tc>, window_params = [{transform_indices = @transform_0, window_bounds = array<i64: 128, 16>}, {pipeline_mode = #tpu.pipeline_mode<synchronous>, transform_indices = @transform_1, window_bounds = array<i64: 32, 16>}, {pipeline_mode = #tpu.pipeline_mode<synchronous>, transform_indices = @transform_2, window_bounds = array<i64: 32, 1>}, {pipeline_mode = #tpu.pipeline_mode<synchronous>, transform_indices = @transform_3, window_bounds = array<i64: 32, 32>}, {pipeline_mode = #tpu.pipeline_mode<synchronous>, transform_indices = @transform_4, window_bounds = array<i64: 32, 1>}, {pipeline_mode = #tpu.pipeline_mode<synchronous>, transform_indices = @transform_5, window_bounds = array<i64: 32, 1>}, {pipeline_mode = #tpu.pipeline_mode<synchronous>, transform_indices = @transform_6, window_bounds = array<i64: 1, 1>}, {transform_indices = @transform_7, window_bounds = array<i64: 1, 128>}]} {
    %c0 = arith.constant 0 : index
    %c0_0 = arith.constant 0 : index
    %0 = vector.load %arg1[%c0, %c0_0] : memref<128x16xf32, #tpu.memory_space<vmem>>, vector<128x16xf32>
    %1 = arith.truncf %0 : vector<128x16xf32> to vector<128x16xbf16>
    %c0_1 = arith.constant 0 : index
    %c0_2 = arith.constant 0 : index
    %2 = vector.load %arg2[%c0_1, %c0_2] : memref<32x16xbf16, #tpu.memory_space<vmem>>, vector<32x16xbf16>
    %c0_3 = arith.constant 0 : index
    %c0_4 = arith.constant 0 : index
    %3 = vector.load %arg3[%c0_3, %c0_4] : memref<32x1xf32, #tpu.memory_space<vmem>>, vector<32x1xf32>
    %cst = arith.constant dense<0.000000e+00> : vector<32x128xf32>
    %4 = tpu.matmul %2, %1, %cst {dimension_numbers = #tpu.dot_dimension_numbers<[1], [1], [0], [0], [0, 0, 1, 0], [], []>} : vector<32x16xbf16>, vector<128x16xbf16>, vector<32x128xf32> -> vector<32x128xf32>
    %5 = vector.broadcast %3 : vector<32x1xf32> to vector<32x128xf32>
    %6 = arith.addf %4, %5 : vector<32x128xf32>
    %7 = arith.truncf %6 : vector<32x128xf32> to vector<32x128xbf16>
    %8 = math.tanh %7 : vector<32x128xbf16>
    %c0_5 = arith.constant 0 : index
    %c0_6 = arith.constant 0 : index
    %9 = vector.load %arg4[%c0_5, %c0_6] : memref<32x32xbf16, #tpu.memory_space<vmem>>, vector<32x32xbf16>
    %c0_7 = arith.constant 0 : index
    %c0_8 = arith.constant 0 : index
    %10 = vector.load %arg5[%c0_7, %c0_8] : memref<32x1xf32, #tpu.memory_space<vmem>>, vector<32x1xf32>
    %cst_9 = arith.constant dense<0.000000e+00> : vector<32x128xf32>
    %11 = tpu.matmul %9, %8, %cst_9 {dimension_numbers = #tpu.dot_dimension_numbers<[1], [0], [0], [1], [0, 0, 1, 1], [], []>} : vector<32x32xbf16>, vector<32x128xbf16>, vector<32x128xf32> -> vector<32x128xf32>
    %12 = vector.broadcast %10 : vector<32x1xf32> to vector<32x128xf32>
    %13 = arith.addf %11, %12 : vector<32x128xf32>
    %14 = arith.truncf %13 : vector<32x128xf32> to vector<32x128xbf16>
    %15 = math.tanh %14 : vector<32x128xbf16>
    %c0_10 = arith.constant 0 : index
    %c0_11 = arith.constant 0 : index
    %16 = vector.load %arg6[%c0_10, %c0_11] : memref<32x1xf32, #tpu.memory_space<vmem>>, vector<32x1xf32>
    %c0_12 = arith.constant 0 : index
    %c0_13 = arith.constant 0 : index
    %17 = vector.load %arg7[%c0_12, %c0_13] : memref<1x1xf32, #tpu.memory_space<vmem>>, vector<1x1xf32>
    %18 = arith.extf %15 : vector<32x128xbf16> to vector<32x128xf32>
    %19 = vector.broadcast %16 : vector<32x1xf32> to vector<32x128xf32>
    %20 = arith.mulf %18, %19 : vector<32x128xf32>
    %cst_14 = arith.constant dense<0.000000e+00> : vector<128xf32>
    %21 = vector.multi_reduction <add>, %20, %cst_14 [0] : vector<32x128xf32> to vector<128xf32>
    %22 = vector.shape_cast %21 : vector<128xf32> to vector<1x128xf32>
    %23 = vector.broadcast %17 : vector<1x1xf32> to vector<1x128xf32>
    %24 = arith.addf %22, %23 : vector<1x128xf32>
    %c0_15 = arith.constant 0 : index
    %c0_16 = arith.constant 0 : index
    %25 = vector.load %arg8[%c0_15, %c0_16] : memref<1x128xf32, #tpu.memory_space<vmem>>, vector<1x128xf32>
    tpu.vector_store %arg8[%c0_15, %c0_16], %24 {strides = array<i32>} : memref<1x128xf32, #tpu.memory_space<vmem>>, vector<1x128xf32>,
    return
  }
  func.func @transform_0(%arg0: i32) -> (i32, i32) {
    %c0_i32 = arith.constant 0 : i32
    %c0_i32_0 = arith.constant 0 : i32
    return %arg0, %c0_i32 : i32, i32
  }
  func.func @transform_1(%arg0: i32) -> (i32, i32) {
    %c0_i32 = arith.constant 0 : i32
    %c0_i32_0 = arith.constant 0 : i32
    %c0_i32_1 = arith.constant 0 : i32
    return %c0_i32, %c0_i32_0 : i32, i32
  }
  func.func @transform_2(%arg0: i32) -> (i32, i32) {
    %c0_i32 = arith.constant 0 : i32
    %c0_i32_0 = arith.constant 0 : i32
    %c0_i32_1 = arith.constant 0 : i32
    return %c0_i32, %c0_i32_0 : i32, i32
  }
  func.func @transform_3(%arg0: i32) -> (i32, i32) {
    %c0_i32 = arith.constant 0 : i32
    %c0_i32_0 = arith.constant 0 : i32
    %c0_i32_1 = arith.constant 0 : i32
    return %c0_i32, %c0_i32_0 : i32, i32
  }
  func.func @transform_4(%arg0: i32) -> (i32, i32) {
    %c0_i32 = arith.constant 0 : i32
    %c0_i32_0 = arith.constant 0 : i32
    %c0_i32_1 = arith.constant 0 : i32
    return %c0_i32, %c0_i32_0 : i32, i32
  }
  func.func @transform_5(%arg0: i32) -> (i32, i32) {
    %c0_i32 = arith.constant 0 : i32
    %c0_i32_0 = arith.constant 0 : i32
    %c0_i32_1 = arith.constant 0 : i32
    return %c0_i32, %c0_i32_0 : i32, i32
  }
  func.func @transform_6(%arg0: i32) -> (i32, i32) {
    %c0_i32 = arith.constant 0 : i32
    %c0_i32_0 = arith.constant 0 : i32
    %c0_i32_1 = arith.constant 0 : i32
    return %c0_i32, %c0_i32_0 : i32, i32
  }
  func.func @transform_7(%arg0: i32) -> (i32, i32) {
    %c0_i32 = arith.constant 0 : i32
    %c0_i32_0 = arith.constant 0 : i32
    return %c0_i32, %arg0 : i32, i32
  }
}

</mosaic_0001>

<bundles_post_ra>
// kernel: tpu_custom_call.1
= control target key start
LH: loop header
LB: loop body
LE: loop exit
PB: predicated region body
PF: predicated region fallthrough
CT: control target
= control target key end

     0   :  { %s533_s0 = inlined_call_operand.vmem [shape: f32[128,16], index: 0, kind: input, shape index: {}]   ;;  %s534_s1 = inlined_call_operand.vmem [shape: bf16[32,16], index: 1, kind: input, shape index: {}]   ;;  %s535_s2 = inlined_call_operand.vmem [shape: f32[32,1], index: 2, kind: input, shape index: {}]   ;;  %s536_s3 = inlined_call_operand.vmem [shape: bf16[32,32], index: 3, kind: input, shape index: {}]   ;;  %s537_s4 = inlined_call_operand.vmem [shape: f32[32,1], index: 4, kind: input, shape index: {}]   ;;  %s538_s5 = inlined_call_operand.vmem [shape: f32[32,1], index: 5, kind: input, shape index: {}]   ;;  %s539_s6 = inlined_call_operand.<no memory space> [shape: f32[1,1], index: 6, kind: input, shape index: {}]   ;;  %s540_s7 = inlined_call_operand.hbm [shape: f32[1,128], index: 7, kind: output, shape index: {}]  }
   0x1   :  { %v12_v0 = vstv %s539_s6 }
   0x2   :  { %13 = vst [vmem:[#allocation2] sm:$0x1] %v12_v0 }
   0x3   :  { %v44_v1 = vld [vmem:[%s533_s0 + $0x70] sm:$0xff]  ;;  %v45_v2 = vld [vmem:[%s533_s0 + $0x78] sm:$0xff]  ;;  %vm92_vm0 = vcmask 130048   ;;  %v42_v4 = vld [vmem:[%s533_s0 + $0x60] sm:$0xff] }
   0x4   :  { %v53_v3 = vpack.c.bf16 %v45_v2, %v44_v1  ;;  %v43_v5 = vld [vmem:[%s533_s0 + $0x68] sm:$0xff] }
   0x6   :  { %v121_v6 = vsel %vm92_vm0, %v53_v3, 0 }
   0x7   :  { %14 = vsyncpa [#allocation4], 0  ;;  %324 = vmatpush.bf16.xpose.msra.mxu2 %v121_v6  ;;  %123 = vmatpush.bf16.xpose.msra.mxu0 %v121_v6  ;;  %v52_v7 = vpack.c.bf16 %v43_v5, %v42_v4  ;;  %v40_v9 = vld [vmem:[%s533_s0 + $0x50] sm:$0xff]  ;;  %v41_v10 = vld [vmem:[%s533_s0 + $0x58] sm:$0xff]  ;;  %v379_v13 = vmov 0   ;;  %vm192_vm1 = vcmask 261120  }
   0x8   :  { %v60_v11 = vld [vmem:[%s535_s2 + $0x10] sm:$0xff]  ;;  %v51_v12 = vpack.c.bf16 %v41_v10, %v40_v9  ;;  %334 = vset.pattern.permute.xlu0 %v379_v13  ;;  %335 = vset.pattern.permute.xlu1 %v379_v13  ;;  %v38_v15 = vld [vmem:[%s533_s0 + $0x40] sm:$0xff]  ;;  %v39_v16 = vld [vmem:[%s533_s0 + $0x48] sm:$0xff]  ;;  %s291_s16 = sshll.u32 %s540_s7, 4  ;;  %s292_s16 = int_to_ptr.hbm [resolvable:$true] %s291_s16 }
   0x9   :  { %v118_v8 = vsel %vm92_vm0, %v52_v7, 0  ;;  %74 = vperm.xlu0 %334, %v60_v11   ;;  %336 = vset.pattern.permute.xlu2 %v379_v13  ;;  %v61_v17 = vld [vmem:[%s535_s2 + $0x18] sm:$0xff]  ;;  %v50_v18 = vpack.c.bf16 %v39_v16, %v38_v15  ;;  %v36_v20 = vld [vmem:[%s533_s0 + $0x30] sm:$0xff]  ;;  %v58_v22 = vld [vmem:[%s535_s2] sm:$0xff] }
   0xa   :  { %v115_v14 = vsel %vm92_vm0, %v51_v12, 0  ;;  %v37_v21 = vld [vmem:[%s533_s0 + $0x38] sm:$0xff]  ;;  %64 = vperm.xlu1 %335, %v58_v22   ;;  %v34_v25 = vld [vmem:[%s533_s0 + $0x20] sm:$0xff]  ;;  %v35_v26 = vld [vmem:[%s533_s0 + $0x28] sm:$0xff] }
   0xb   :  { %v112_v19 = vsel %vm92_vm0, %v50_v18, 0  ;;  %v49_v23 = vpack.c.bf16 %v37_v21, %v36_v20  ;;  %v160_v27 = vld [vmem:[%s537_s4 + $0x10] sm:$0xff]  ;;  %v59_v28 = vld [vmem:[%s535_s2 + $0x8] sm:$0xff]  ;;  %v48_v29 = vpack.c.bf16 %v35_v26, %v34_v25  ;;  %v33_v32 = vld [vmem:[%s533_s0 + $0x18] sm:$0xff] }
   0xc   :  { %v32_v31 = vld [vmem:[%s533_s0 + $0x10] sm:$0xff]  ;;  %v235_v33 = vld [vmem:[%s538_s5 + $0x8] sm:$0xff]  ;;  %v161_v34 = vld [vmem:[%s537_s4 + $0x18] sm:$0xff] }
   0xd   :  { %v109_v24 = vsel %vm92_vm0, %v49_v23, 0  ;;  %v106_v30 = vsel %vm92_vm0, %v48_v29, 0  ;;  %v47_v35 = vpack.c.bf16 %v33_v32, %v32_v31  ;;  %v30_v37 = vld [vmem:[%s533_s0] sm:$0xff]  ;;  %v31_v38 = vld [vmem:[%s533_s0 + $0x8] sm:$0xff]  ;;  %v236_v40 = vld [vmem:[%s538_s5 + $0x10] sm:$0xff] }
   0xe   :  { %v238_v39 = vld [vmem:[#allocation2] sm:$0x1]  ;;  %v46_v41 = vpack.c.bf16 %v31_v38, %v30_v37  ;;  %v321_v43 = vld [vmem:[%s534_s1 + $0x8] sm:$0xff]  ;;  %v237_v9 = vld [vmem:[%s538_s5 + $0x18] sm:$0xff] }
   0xf   :  { %325 = vmatpush.bf16.xpose.msra.mxu2 %v118_v8  ;;  %124 = vmatpush.bf16.xpose.msra.mxu0 %v118_v8  ;;  %v103_v36 = vsel %vm92_vm0, %v47_v35, 0  ;;  %v320_v44 = vld [vmem:[%s534_s1] sm:$0xff]  ;;  %v159_v2 = vld [vmem:[%s537_s4 + $0x8] sm:$0xff] }
  0x10   :  { %v100_v42 = vsel %vm92_vm0, %v46_v41, 0  ;;  %v158_v63 = vld [vmem:[%s537_s4] sm:$0xff]  ;;  %v323_v10 = vld [vmem:[%s536_s3 + $0x8] sm:$0xff] }
  0x11   :  { %79 = vperm.xlu0 %334, %v61_v17   ;;  %164 = vperm.xlu2 %336, %v158_v63   ;;  %v322_v7 = vld [vmem:[%s536_s3] sm:$0xff]  ;;  %s380_s3 = smov [#allocation3]  }
  0x12   :  { %69 = vperm.xlu1 %335, %v59_v28   ;;  %v234_v8 = vld [vmem:[%s538_s5] sm:$0xff]  ;;  %s289_s5 = sshll.u32 %s380_s3, 4  ;;  %s290_s5 = int_to_ptr.vmem [resolvable:$true] %s289_s5 }
  0x17   :  { %326 = vmatpush.bf16.xpose.msra.mxu2 %v115_v14  ;;  %125 = vmatpush.bf16.xpose.msra.mxu0 %v115_v14 }
  0x19   :  { %174 = vperm.xlu0 %334, %v160_v27   ;;  %169 = vperm.xlu2 %336, %v159_v2  }
  0x1a   :  { %179 = vperm.xlu1 %335, %v161_v34  }
  0x1f   :  { %327 = vmatpush.bf16.xpose.msra.mxu2 %v112_v19  ;;  %126 = vmatpush.bf16.xpose.msra.mxu0 %v112_v19 }
  0x21   :  { %250 = vperm.xlu0 %334, %v235_v33   ;;  %245 = vperm.xlu2 %336, %v234_v8  }
  0x22   :  { %255 = vperm.xlu1 %335, %v236_v40  }
  0x27   :  { %328 = vmatpush.bf16.xpose.msra.mxu2 %v109_v24  ;;  %127 = vmatpush.bf16.xpose.msra.mxu0 %v109_v24 }
  0x29   :  { %278 = vperm.xlu0 %334, %v238_v39   ;;  %260 = vperm.xlu2 %336, %v237_v9  }
  0x2f   :  { %329 = vmatpush.bf16.xpose.msra.mxu2 %v106_v30  ;;  %128 = vmatpush.bf16.xpose.msra.mxu0 %v106_v30 }
  0x37   :  { %330 = vmatpush.bf16.xpose.msra.mxu2 %v103_v36  ;;  %129 = vmatpush.bf16.xpose.msra.mxu0 %v103_v36 }
  0x3f   :  { %331 = vmatpush.bf16.xpose.msra.mxu2 %v100_v42  ;;  %130 = vmatpush.bf16.xpose.msra.mxu0 %v100_v42 }
  0x46   :  { %309 = vmatmul.msk.bf16.vlgmr.msra.gmra.mxu2 %vm92_vm0, %v321_v43  ;;  %308 = vmatmul.msk.bf16.vlgmr.msra.gmra.mxu0 %vm92_vm0, %v320_v44 }
  0x6b   :  { %v165_v11 = vpop.permute.xlu2 %164 }
  0x73   :  { %v170_v13 = vpop.permute.xlu2 %169 }
  0x7b   :  { %v75_v47 = vpop.permute.xlu0 %74  ;;  %v246_v37 = vpop.permute.xlu2 %245 }
  0x7c   :  { %v65_v45 = vpop.permute.xlu1 %64 }
  0x83   :  { %v80_v53 = vpop.permute.xlu0 %79 }
  0x84   :  { %v70_v50 = vpop.permute.xlu1 %69 }
  0x8b   :  { %v175_v20 = vpop.permute.xlu0 %174 }
  0x8c   :  { %v180_v26 = vpop.permute.xlu1 %179 }
  0x93   :  { %v251_v41 = vpop.permute.xlu0 %250 }
  0x94   :  { %v256_v44 = vpop.permute.xlu1 %255 }
  0xc3   :  { %v132_v46 = vpop.f32.mrf.mxu0 }
  0xc4   :  { %v133_v51 = vadd.f32 %v132_v46, %v65_v45 }
  0xc9   :  { %v137_v48 = vpop.f32.mrf.mxu2 }
  0xca   :  { %v138_v55 = vadd.f32 %v137_v48, %v75_v47 }
  0xcb   :  { %v134_v49 = vpop.f32.mrf.mxu0 }
  0xcc   :  { %v135_v52 = vadd.f32 %v134_v49, %v70_v50  ;;  %v261_v50 = vpop.permute.xlu2 %260 }
  0xce   :  { %v142_v56 = vpack.c.bf16 %v135_v52, %v133_v51 }
  0xd0   :  { %v144_v59 = vunpack.c.l.bf16 %v142_v56  ;;  %v145_v62 = vunpack.c.h.bf16 %v142_v56 }
  0xd1   :  { %v139_v54 = vpop.f32.mrf.mxu2 }
  0xd2   :  { %v140_v57 = vadd.f32 %v139_v54, %v80_v53 }
  0xd4   :  { %v143_v58 = vpack.c.bf16 %v140_v57, %v138_v55 }
  0xd6   :  { %v146_v60 = vunpack.c.l.bf16 %v143_v58  ;;  %v147_v61 = vunpack.c.h.bf16 %v143_v58  ;;  %v279_v58 = vpop.permute.xlu0 %278 }
  0xd8   :  { %337 = vtanh.f32 %v146_v60  ;;  %v281_v60 = vperm.slane %v279_v58, 0 }
  0xd9   :  { %339 = vtanh.f32 %v147_v61 }
  0xda   :  { %341 = vtanh.f32 %v144_v59 }
  0xdb   :  { %343 = vtanh.f32 %v145_v62 }
  0xde   :  { %v338_v0 = vpop.eup %337 }
  0xdf   :  { %v340_v1 = vpop.eup %339 }
  0xe0   :  { %v342_v3 = vpop.eup %341  ;;  %v153_v4 = vpack.c.bf16 %v340_v1, %v338_v0 }
  0xe1   :  { %v344_v5 = vpop.eup %343 }
  0xe2   :  { %205 = vmatpush.bf16.msra.mxu1 %v153_v4  ;;  %v152_v6 = vpack.c.bf16 %v344_v5, %v342_v3 }
  0xe6   :  { %206 = vmatpush.bf16.msra.mxu1 %v152_v6 }
  0xe9   :  { %318 = vmatmul.msk.bf16.vlgmr.msra.gmra.mxu1 %vm192_vm1, %v322_v7 }
  0xf9   :  { %319 = vmatmul.msk.bf16.gmra.mxu1 %vm192_vm1, %v323_v10 }
 0x166   :  { %v208_v12 = vpop.f32.mrf.mxu1 }
 0x167   :  { %v209_v15 = vadd.f32 %v208_v12, %v165_v11 }
 0x169   :  { %v218_v18 = vpack.c.bf16 %v209_v15, %v209_v15 }
 0x16b   :  { %v222_v22 = vunpack.c.l.bf16 %v218_v18 }
 0x16e   :  { %v210_v14 = vpop.f32.mrf.mxu1 }
 0x16f   :  { %v211_v16 = vadd.f32 %v210_v14, %v170_v13 }
 0x171   :  { %v219_v17 = vpack.c.bf16 %v211_v16, %v211_v16 }
 0x173   :  { %v223_v19 = vunpack.c.l.bf16 %v219_v17 }
 0x175   :  { %345 = vtanh.f32 %v223_v19 }
 0x176   :  { %v213_v21 = vpop.f32.mrf.mxu1  ;;  %347 = vtanh.f32 %v222_v22 }
 0x177   :  { %v214_v23 = vadd.f32 %v213_v21, %v175_v20 }
 0x179   :  { %v220_v24 = vpack.c.bf16 %v214_v23, %v214_v23 }
 0x17b   :  { %v224_v25 = vunpack.c.l.bf16 %v220_v24  ;;  %v346_v28 = vpop.eup %345 }
 0x17c   :  { %v348_v30 = vpop.eup %347  ;;  %v231_v32 = vpack.c.bf16 %v346_v28, %v346_v28 }
 0x17d   :  { %349 = vtanh.f32 %v224_v25  ;;  %v230_v35 = vpack.c.bf16 %v348_v30, %v348_v30 }
 0x17e   :  { %v215_v27 = vpop.f32.mrf.mxu1  ;;  %v240_v38 = vunpack.c.l.bf16 %v231_v32 }
 0x17f   :  { %v216_v29 = vadd.f32 %v215_v27, %v180_v26  ;;  %v239_v39 = vunpack.c.l.bf16 %v230_v35 }
 0x180   :  { %v264_v42 = vmul.f32 %v251_v41, %v240_v38 }
 0x181   :  { %v221_v31 = vpack.c.bf16 %v216_v29, %v216_v29  ;;  %v263_v45 = vmul.f32 %v246_v37, %v239_v39 }
 0x183   :  { %v350_v33 = vpop.eup %349  ;;  %v225_v34 = vunpack.c.l.bf16 %v221_v31  ;;  %v267_v48 = vadd.f32 %v264_v42, %v263_v45 }
 0x184   :  { %v232_v36 = vpack.c.bf16 %v350_v33, %v350_v33 }
 0x185   :  { %351 = vtanh.f32 %v225_v34 }
 0x186   :  { %v241_v40 = vunpack.c.l.bf16 %v232_v36 }
 0x188   :  { %v265_v46 = vmul.f32 %v256_v44, %v241_v40 }
 0x18a   :  { %v268_v51 = vadd.f32 %v267_v48, %v265_v46 }
 0x18b   :  { %v352_v43 = vpop.eup %351 }
 0x18c   :  { %v233_v47 = vpack.c.bf16 %v352_v43, %v352_v43 }
 0x18e   :  { %v242_v49 = vunpack.c.l.bf16 %v233_v47 }
 0x190   :  { %v266_v52 = vmul.f32 %v261_v50, %v242_v49 }
 0x192   :  { %v269_v53 = vadd.f32 %v268_v51, %v266_v52 }
 0x194   :  { %v270_v54 = vrot.slane %v269_v53, 4 }
 0x196   :  { %v271_v55 = vadd.f32 %v270_v54, %v269_v53 }
 0x198   :  { %v272_v56 = vrot.slane %v271_v55, 2 }
 0x19a   :  { %v273_v57 = vadd.f32 %v272_v56, %v271_v55 }
 0x19c   :  { %v274_v59 = vrot.slane %v273_v57, 1 }
 0x19e   :  { %v275_v61 = vadd.f32 %v274_v59, %v273_v57 }
 0x1a0   :  { %v282_v62 = vadd.f32 %v281_v60, %v275_v61 }
 0x1a2   :  { %283 = vst [vmem:[#allocation3] sm:$0x1] %v282_v62 }
 0x1a3   :  { %294 = dma.vmem_to_hbm [thread:$0]  %s290_s5, 16, %s292_s16, [#allocation4]  }
 0x1a4   :  { %377 = dma.done.wait [#allocation4], 16  }
 0x1a5   :  { %378 = vsyncadd [#allocation4], 4294967280 }
 0x1a6   :  { %299 = vsyncpa [#allocation4], 1 }

</bundles_post_ra>
